<compile_context>
chip_gen: v6e
topology: v6e:2x2x1
jax: 0.10.0
libtpu: 0.0.40
codegen_flags: <defaults>
</compile_context>

<pallas_src>
import functools

import jax
import jax.numpy as jnp
from jax.experimental import pallas as pl
from jax.experimental.pallas import tpu as pltpu


def _round_up(x, m):
    return ((x + m - 1) // m) * m


def _log_softmax_masked(z, num_classes):
    # Stable log-softmax over the real class lanes only; padded lanes (>= C)
    # are written as -inf and sliced away by the wrapper.
    mask = jax.lax.broadcasted_iota(jnp.int32, z.shape, 1) < num_classes
    zm = jnp.where(mask, z, -jnp.inf)
    m = jnp.max(zm, axis=1, keepdims=True)
    s = zm - m
    lse = jnp.log(jnp.sum(jnp.exp(s), axis=1, keepdims=True))
    return s - lse


# --------------------------------------------------------------------------
# Small-graph path: MLP + K APPNP steps + log_softmax fused in ONE call.
# --------------------------------------------------------------------------
def _fused_kernel(x_ref, w1_ref, b1_ref, w2_ref, b2_ref, a_ref, o_ref, *,
                  K, alpha, num_classes):
    # TODO(synk): dropout is identity in eval mode (training=False); training
    # mode dropout (pltpu.prng_*) is not emitted.
    # bf16 x bf16 MXU matmuls with f32 accumulation; element-wise math in f32.
    h = jnp.dot(x_ref[...], w1_ref[...],
                preferred_element_type=jnp.float32) + b1_ref[...]
    h = jnp.maximum(h, 0.0)
    z0 = jnp.dot(h.astype(jnp.bfloat16), w2_ref[...],
                 preferred_element_type=jnp.float32) + b2_ref[...]

    a = a_ref[...]                                  # bf16, fully VMEM-resident

    def body(_, z):
        zb = z.astype(jnp.bfloat16)                 # match bf16 propagation
        return (1.0 - alpha) * jnp.dot(a, zb,
                                       preferred_element_type=jnp.float32) \
               + alpha * z0

    z = jax.lax.fori_loop(0, K, body, z0, unroll=True)
    o_ref[...] = _log_softmax_masked(z, num_classes).astype(o_ref.dtype)


def _fused_forward(xp, w1p, b1p, w2p, b2p, ap, *, K, alpha, num_classes):
    n_pad, fp = xp.shape
    hp = w1p.shape[1]
    cp = w2p.shape[1]
    kernel = functools.partial(_fused_kernel, K=K, alpha=alpha,
                               num_classes=num_classes)
    cost = pl.CostEstimate(
        flops=2 * n_pad * fp * hp + 2 * n_pad * hp * cp
              + K * 2 * n_pad * n_pad * cp,
        transcendentals=2 * n_pad * cp,
        bytes_accessed=2 * (n_pad * fp + fp * hp + hp * cp + n_pad * n_pad)
                       + 4 * (hp + cp) + 4 * n_pad * cp)
    return pl.pallas_call(
        kernel,
        out_shape=jax.ShapeDtypeStruct((n_pad, cp), jnp.float32),
        grid=(1,),
        in_specs=[
            pl.BlockSpec((n_pad, fp), lambda i: (0, 0)),
            pl.BlockSpec((fp, hp), lambda i: (0, 0)),
            pl.BlockSpec((1, hp), lambda i: (0, 0)),
            pl.BlockSpec((hp, cp), lambda i: (0, 0)),
            pl.BlockSpec((1, cp), lambda i: (0, 0)),
            pl.BlockSpec((n_pad, n_pad), lambda i: (0, 0)),
        ],
        out_specs=pl.BlockSpec((n_pad, cp), lambda i: (0, 0)),
        compiler_params=pltpu.CompilerParams(
            dimension_semantics=("arbitrary",),
            vmem_limit_bytes=32 * 1024 * 1024),
        cost_estimate=cost,
    )(xp, w1p, b1p, w2p, b2p, ap)


# --------------------------------------------------------------------------
# Large-graph path: row-tiled MLP + per-step tiled propagation (z resident).
# --------------------------------------------------------------------------
def _mlp_kernel(x_ref, w1_ref, b1_ref, w2_ref, b2_ref, z0_ref):
    h = jnp.dot(x_ref[...], w1_ref[...],
                preferred_element_type=jnp.float32) + b1_ref[...]
    h = jnp.maximum(h, 0.0)
    z0_ref[...] = (jnp.dot(h.astype(jnp.bfloat16), w2_ref[...],
                           preferred_element_type=jnp.float32) + b2_ref[...])


def _mlp_forward(xp, w1p, b1p, w2p, b2p, *, tm):
    n_pad, fp = xp.shape
    hp = w1p.shape[1]
    cp = w2p.shape[1]
    cost = pl.CostEstimate(
        flops=2 * n_pad * fp * hp + 2 * n_pad * hp * cp,
        transcendentals=0,
        bytes_accessed=2 * (n_pad * fp + fp * hp + hp * cp)
                       + 4 * (hp + cp) + 4 * n_pad * cp)
    return pl.pallas_call(
        _mlp_kernel,
        out_shape=jax.ShapeDtypeStruct((n_pad, cp), jnp.float32),
        grid=(n_pad // tm,),
        in_specs=[
            pl.BlockSpec((tm, fp), lambda i: (i, 0)),
            pl.BlockSpec((fp, hp), lambda i: (0, 0)),
            pl.BlockSpec((1, hp), lambda i: (0, 0)),
            pl.BlockSpec((hp, cp), lambda i: (0, 0)),
            pl.BlockSpec((1, cp), lambda i: (0, 0)),
        ],
        out_specs=pl.BlockSpec((tm, cp), lambda i: (i, 0)),
        compiler_params=pltpu.CompilerParams(
            dimension_semantics=("parallel",),
            vmem_limit_bytes=32 * 1024 * 1024),
        cost_estimate=cost,
    )(xp, w1p, b1p, w2p, b2p)


def _prop_kernel(a_ref, z_ref, z0_ref, o_ref, acc_ref, *,
                 alpha, num_classes, apply_log_softmax, tk):
    j = pl.program_id(1)

    @pl.when(j == 0)
    def _():
        acc_ref[...] = jnp.zeros_like(acc_ref)

    # z is fully VMEM-resident (full-array BlockSpec); slice the K-block here.
    start = pl.multiple_of(j * tk, tk)
    z_blk = z_ref[pl.ds(start, tk), :].astype(jnp.bfloat16)
    # bf16 x bf16 tiles -> f32 accumulation on the MXU.
    acc_ref[...] += jnp.dot(a_ref[...], z_blk,
                            preferred_element_type=jnp.float32)

    @pl.when(j == pl.num_programs(1) - 1)
    def _():
        z = (1.0 - alpha) * acc_ref[...] + alpha * z0_ref[...]
        if apply_log_softmax:
            z = _log_softmax_masked(z, num_classes)
        # Intermediate steps write bf16 directly (no wrapper-side cast pass).
        o_ref[...] = z.astype(o_ref.dtype)


def _prop_step(a_bf16, z_in, z0, *, alpha, num_classes, apply_log_softmax,
               out_dtype, tm, tk):
    n_pad = a_bf16.shape[0]
    cp = z0.shape[1]
    kernel = functools.partial(_prop_kernel, alpha=alpha,
                               num_classes=num_classes,
                               apply_log_softmax=apply_log_softmax, tk=tk)
    z_bytes = n_pad * cp * jnp.dtype(z_in.dtype).itemsize
    out_bytes = n_pad * cp * jnp.dtype(out_dtype).itemsize
    cost = pl.CostEstimate(
        flops=2 * n_pad * n_pad * cp,
        transcendentals=(n_pad * cp) if apply_log_softmax else 0,
        bytes_accessed=2 * n_pad * n_pad + z_bytes + 4 * n_pad * cp + out_bytes)
    return pl.pallas_call(
        kernel,
        out_shape=jax.ShapeDtypeStruct((n_pad, cp), out_dtype),
        grid=(n_pad // tm, n_pad // tk),
        in_specs=[
            # A_hat is the only streamed operand -> deeper buffering.
            pl.BlockSpec((tm, tk), lambda i, j: (i, j),
                         pipeline_mode=pl.Buffered(3)),
            # z fully VMEM-resident across the whole grid.
            pl.BlockSpec((n_pad, cp), lambda i, j: (0, 0)),
            pl.BlockSpec((tm, cp), lambda i, j: (i, 0)),
        ],
        out_specs=pl.BlockSpec((tm, cp), lambda i, j: (i, 0)),
        scratch_shapes=[pltpu.VMEM((tm, cp), jnp.float32)],
        compiler_params=pltpu.CompilerParams(
            dimension_semantics=("parallel", "arbitrary"),
            vmem_limit_bytes=48 * 1024 * 1024),
        cost_estimate=cost,
    )(a_bf16, z_in, z0)


# ------------------------------------------------------------------- wrapper
def _geometry(N):
    n8 = _round_up(N, 8)
    if n8 <= 512:
        # Single fused call: everything VMEM-resident.
        return {"path": "fused", "n_pad": n8, "tm": n8, "tk": n8}
    tm = 512
    tk = min(2048, _round_up(N, 512))
    n_pad = _round_up(N, max(tm, tk))
    return {"path": "tiled", "n_pad": n_pad, "tm": tm, "tk": tk}


def appnp_net_prepare(x, w1, b1, w2, b2, a_hat):
    """Pad + cast once per graph (hoisted out of the per-forward path).

    x:[N,F], w1:[F,H], b1:[1,H], w2:[H,C], b2:[1,C], a_hat:[N,N] GCN-norm."""
    N, F = x.shape
    H = w1.shape[1]
    C = w2.shape[1]
    geo = _geometry(N)
    n_pad = geo["n_pad"]
    FP = _round_up(F, 128)
    HP = _round_up(H, 128)
    CP = _round_up(C, 128)
    f32, bf16 = jnp.float32, jnp.bfloat16
    # Matmul operands live in bf16 (half DMA bytes, full MXU rate); biases f32.
    xp = jnp.zeros((n_pad, FP), bf16).at[:N, :F].set(x.astype(bf16))
    w1p = jnp.zeros((FP, HP), bf16).at[:F, :H].set(w1.astype(bf16))
    b1p = jnp.zeros((1, HP), f32).at[:, :H].set(b1.reshape(1, H).astype(f32))
    w2p = jnp.zeros((HP, CP), bf16).at[:H, :C].set(w2.astype(bf16))
    b2p = jnp.zeros((1, CP), f32).at[:, :C].set(b2.reshape(1, C).astype(f32))
    ap = jnp.zeros((n_pad, n_pad), bf16).at[:N, :N].set(a_hat.astype(bf16))
    # TODO(synk): for very large graphs, replace dense A_hat @ z with a CSR
    # SpMM using PrefetchScalarGridSpec row-offset prefetch + row gather, and
    # consider fp8 A_hat on v7x / int8 on v5e-v6e if accuracy allows.
    return {"xp": xp, "w1p": w1p, "b1p": b1p, "w2p": w2p, "b2p": b2p,
            "ap": ap, "N": N, "C": C, "geo": geo}


def appnp_net_forward_prepared(prep, *, K, alpha):
    assert K >= 1
    geo = prep["geo"]
    N, C = prep["N"], prep["C"]
    if geo["path"] == "fused":
        zp = _fused_forward(prep["xp"], prep["w1p"], prep["b1p"],
                            prep["w2p"], prep["b2p"], prep["ap"],
                            K=K, alpha=alpha, num_classes=C)
    else:
        # TODO(synk): on single-TC chips (v5e/v6e) the K steps could be fused
        # into one call with grid (K, i, j) and a ping-pong VMEM z; kept as
        # per-step calls here so the row axis stays "parallel" on v7x.
        z0 = _mlp_forward(prep["xp"], prep["w1p"], prep["b1p"],
                          prep["w2p"], prep["b2p"], tm=geo["tm"])
        z = z0
        for k in range(K):
            last = (k == K - 1)
            z = _prop_step(prep["ap"], z, z0, alpha=alpha, num_classes=C,
                           apply_log_softmax=last,
                           out_dtype=jnp.float32 if last else jnp.bfloat16,
                           tm=geo["tm"], tk=geo["tk"])
        zp = z
    return zp[:N, :C]


def appnp_net_forward(x, w1, b1, w2, b2, a_hat, *, K, alpha):
    prep = appnp_net_prepare(x, w1, b1, w2, b2, a_hat)
    return appnp_net_forward_prepared(prep, K=K, alpha=alpha)


def build_gcn_norm_adj(edge_index, num_nodes):
    """Dense D^{-1/2} (A + I) D^{-1/2} from edge_index (PyG gcn_norm)."""
    src = edge_index[0]
    dst = edge_index[1]
    loop = jnp.arange(num_nodes, dtype=edge_index.dtype)
    src = jnp.concatenate([src, loop])
    dst = jnp.concatenate([dst, loop])
    a = jnp.zeros((num_nodes, num_nodes), jnp.float32).at[dst, src].add(1.0)
    deg = jnp.sum(a, axis=1)
    dinv = jnp.where(deg > 0, 1.0 / jnp.sqrt(deg), 0.0)
    return dinv[:, None] * a * dinv[None, :]


if __name__ == "__main__":
    # Small, deterministic problem sizes.
    N = 32            # num nodes
    F = 16            # dataset.num_features
    H = 32            # args.hidden
    C = 8             # dataset.num_classes
    K = 3             # args.K
    ALPHA = 0.1       # args.alpha

    key = jax.random.PRNGKey(0)
    kx, ke, kw1, kb1, kw2, kb2 = jax.random.split(key, 6)

    x = jax.random.normal(kx, (N, F), jnp.float32)

    # A small random (symmetric) edge set.
    E = 64
    src = jax.random.randint(ke, (E,), 0, N, dtype=jnp.int32)
    dst = jnp.roll(src, 7)
    edge_index = jnp.stack(
        [jnp.concatenate([src, dst]), jnp.concatenate([dst, src])], axis=0)

    # Deterministic parameter init (Linear-like fan-in scaling), stored
    # pre-transposed as [in, out].
    w1 = jax.random.uniform(kw1, (F, H), jnp.float32, -1.0, 1.0) / jnp.sqrt(F)
    b1 = jax.random.uniform(kb1, (1, H), jnp.float32, -1.0, 1.0) / jnp.sqrt(F)
    w2 = jax.random.uniform(kw2, (H, C), jnp.float32, -1.0, 1.0) / jnp.sqrt(H)
    b2 = jax.random.uniform(kb2, (1, C), jnp.float32, -1.0, 1.0) / jnp.sqrt(H)

    a_hat = build_gcn_norm_adj(edge_index, N)

    out = appnp_net_forward(x, w1, b1, w2, b2, a_hat, K=K, alpha=ALPHA)
    out = jax.block_until_ready(out)

    # Pure-JAX reference mirroring the kernel's bf16 quantization of matmul
    # operands (accumulation stays f32 on both sides) so the comparison is
    # tight.
    f32, bf16 = jnp.float32, jnp.bfloat16
    xb = x.astype(bf16).astype(f32)
    w1b = w1.astype(bf16).astype(f32)
    w2b = w2.astype(bf16).astype(f32)
    a_bf = a_hat.astype(bf16).astype(f32)
    h_ref = jnp.maximum(xb @ w1b + b1, 0.0)
    hb = h_ref.astype(bf16).astype(f32)
    z0_ref = hb @ w2b + b2
    z_ref = z0_ref
    for _ in range(K):
        zb = z_ref.astype(bf16).astype(f32)
        z_ref = (1.0 - ALPHA) * (a_bf @ zb) + ALPHA * z0_ref
    ref = jax.nn.log_softmax(z_ref, axis=1)

    assert out.shape == (N, C), f"bad output shape {out.shape}"
    assert jnp.allclose(out, ref, atol=2e-3, rtol=2e-3), "mismatch vs reference"

    print("KERNEL_OK")
</pallas_src>

<mosaic_0001>
module attributes {stable_mosaic.version = 11 : i64} {
  func.func @_fused_kernel(%arg0: i32, %arg1: memref<32x128xbf16, #tpu.memory_space<vmem>>, %arg2: memref<128x128xbf16, #tpu.memory_space<vmem>>, %arg3: memref<1x128xf32, #tpu.memory_space<vmem>>, %arg4: memref<128x128xbf16, #tpu.memory_space<vmem>>, %arg5: memref<1x128xf32, #tpu.memory_space<vmem>>, %arg6: memref<32x32xbf16, #tpu.memory_space<vmem>>, %arg7: memref<32x128xf32, #tpu.memory_space<vmem>>) attributes {dimension_semantics = [#tpu.dimension_semantics<arbitrary>], iteration_bounds = array<i64: 1>, scalar_prefetch = 0 : i64, scratch_operands = 0 : i64, tpu.core_type = #tpu.core_type<tc>, window_params = [{pipeline_mode = #tpu.pipeline_mode<synchronous>, transform_indices = @transform_0, window_bounds = array<i64: 32, 128>}, {pipeline_mode = #tpu.pipeline_mode<synchronous>, transform_indices = @transform_1, window_bounds = array<i64: 128, 128>}, {pipeline_mode = #tpu.pipeline_mode<synchronous>, transform_indices = @transform_2, window_bounds = array<i64: 1, 128>}, {pipeline_mode = #tpu.pipeline_mode<synchronous>, transform_indices = @transform_3, window_bounds = array<i64: 128, 128>}, {pipeline_mode = #tpu.pipeline_mode<synchronous>, transform_indices = @transform_4, window_bounds = array<i64: 1, 128>}, {pipeline_mode = #tpu.pipeline_mode<synchronous>, transform_indices = @transform_5, window_bounds = array<i64: 32, 32>}, {pipeline_mode = #tpu.pipeline_mode<synchronous>, transform_indices = @transform_6, window_bounds = array<i64: 32, 128>}]} {
    %c0 = arith.constant 0 : index
    %c0_0 = arith.constant 0 : index
    %0 = vector.load %arg1[%c0, %c0_0] : memref<32x128xbf16, #tpu.memory_space<vmem>>, vector<32x128xbf16>
    %c0_1 = arith.constant 0 : index
    %c0_2 = arith.constant 0 : index
    %1 = vector.load %arg2[%c0_1, %c0_2] : memref<128x128xbf16, #tpu.memory_space<vmem>>, vector<128x128xbf16>
    %cst = arith.constant dense<0.000000e+00> : vector<32x128xf32>
    %2 = tpu.matmul %0, %1, %cst {dimension_numbers = #tpu.dot_dimension_numbers<[1], [0], [0], [1], [0, 0, 1, 1], [], []>} : vector<32x128xbf16>, vector<128x128xbf16>, vector<32x128xf32> -> vector<32x128xf32>
    %c0_3 = arith.constant 0 : index
    %c0_4 = arith.constant 0 : index
    %3 = vector.load %arg3[%c0_3, %c0_4] : memref<1x128xf32, #tpu.memory_space<vmem>>, vector<1x128xf32>
    %4 = vector.broadcast %3 : vector<1x128xf32> to vector<32x128xf32>
    %5 = arith.addf %2, %4 : vector<32x128xf32>
    %cst_5 = arith.constant 0.000000e+00 : f32
    %6 = vector.broadcast %cst_5 : f32 to vector<32x128xf32>
    %7 = arith.maximumf %5, %6 : vector<32x128xf32>
    %8 = arith.truncf %7 : vector<32x128xf32> to vector<32x128xbf16>
    %c0_6 = arith.constant 0 : index
    %c0_7 = arith.constant 0 : index
    %9 = vector.load %arg4[%c0_6, %c0_7] : memref<128x128xbf16, #tpu.memory_space<vmem>>, vector<128x128xbf16>
    %cst_8 = arith.constant dense<0.000000e+00> : vector<32x128xf32>
    %10 = tpu.matmul %8, %9, %cst_8 {dimension_numbers = #tpu.dot_dimension_numbers<[1], [0], [0], [1], [0, 0, 1, 1], [], []>} : vector<32x128xbf16>, vector<128x128xbf16>, vector<32x128xf32> -> vector<32x128xf32>
    %c0_9 = arith.constant 0 : index
    %c0_10 = arith.constant 0 : index
    %11 = vector.load %arg5[%c0_9, %c0_10] : memref<1x128xf32, #tpu.memory_space<vmem>>, vector<1x128xf32>
    %12 = vector.broadcast %11 : vector<1x128xf32> to vector<32x128xf32>
    %13 = arith.addf %10, %12 : vector<32x128xf32>
    %c0_11 = arith.constant 0 : index
    %c0_12 = arith.constant 0 : index
    %14 = vector.load %arg6[%c0_11, %c0_12] : memref<32x32xbf16, #tpu.memory_space<vmem>>, vector<32x32xbf16>
    %c0_i32 = arith.constant 0 : i32
    %15 = arith.truncf %13 : vector<32x128xf32> to vector<32x128xbf16>
    %cst_13 = arith.constant dense<0.000000e+00> : vector<32x128xf32>
    %16 = tpu.matmul %14, %15, %cst_13 {dimension_numbers = #tpu.dot_dimension_numbers<[1], [0], [0], [1], [0, 0, 1, 1], [], []>} : vector<32x32xbf16>, vector<32x128xbf16>, vector<32x128xf32> -> vector<32x128xf32>
    %cst_14 = arith.constant 0.899999976 : f32
    %17 = vector.broadcast %cst_14 : f32 to vector<32x128xf32>
    %18 = arith.mulf %17, %16 : vector<32x128xf32>
    %cst_15 = arith.constant 1.000000e-01 : f32
    %19 = vector.broadcast %cst_15 : f32 to vector<32x128xf32>
    %20 = arith.mulf %19, %13 : vector<32x128xf32>
    %21 = arith.addf %18, %20 : vector<32x128xf32>
    %c1_i32 = arith.constant 1 : i32
    %22 = arith.truncf %21 : vector<32x128xf32> to vector<32x128xbf16>
    %cst_16 = arith.constant dense<0.000000e+00> : vector<32x128xf32>
    %23 = tpu.matmul %14, %22, %cst_16 {dimension_numbers = #tpu.dot_dimension_numbers<[1], [0], [0], [1], [0, 0, 1, 1], [], []>} : vector<32x32xbf16>, vector<32x128xbf16>, vector<32x128xf32> -> vector<32x128xf32>
    %cst_17 = arith.constant 0.899999976 : f32
    %24 = vector.broadcast %cst_17 : f32 to vector<32x128xf32>
    %25 = arith.mulf %24, %23 : vector<32x128xf32>
    %cst_18 = arith.constant 1.000000e-01 : f32
    %26 = vector.broadcast %cst_18 : f32 to vector<32x128xf32>
    %27 = arith.mulf %26, %13 : vector<32x128xf32>
    %28 = arith.addf %25, %27 : vector<32x128xf32>
    %c2_i32 = arith.constant 2 : i32
    %29 = arith.truncf %28 : vector<32x128xf32> to vector<32x128xbf16>
    %cst_19 = arith.constant dense<0.000000e+00> : vector<32x128xf32>
    %30 = tpu.matmul %14, %29, %cst_19 {dimension_numbers = #tpu.dot_dimension_numbers<[1], [0], [0], [1], [0, 0, 1, 1], [], []>} : vector<32x32xbf16>, vector<32x128xbf16>, vector<32x128xf32> -> vector<32x128xf32>
    %cst_20 = arith.constant 0.899999976 : f32
    %31 = vector.broadcast %cst_20 : f32 to vector<32x128xf32>
    %32 = arith.mulf %31, %30 : vector<32x128xf32>
    %cst_21 = arith.constant 1.000000e-01 : f32
    %33 = vector.broadcast %cst_21 : f32 to vector<32x128xf32>
    %34 = arith.mulf %33, %13 : vector<32x128xf32>
    %35 = arith.addf %32, %34 : vector<32x128xf32>
    %36 = tpu.iota {dimensions = array<i32: 1>} : vector<32x128xi32>
    %c8_i32 = arith.constant 8 : i32
    %37 = vector.broadcast %c8_i32 : i32 to vector<32x128xi32>
    %38 = arith.cmpi slt, %36, %37 : vector<32x128xi32>
    %cst_22 = arith.constant 0xFF800000 : f32
    %39 = vector.broadcast %cst_22 : f32 to vector<32x128xf32>
    %40 = arith.select %38, %35, %39 : vector<32x128xi1>, vector<32x128xf32>
    %cst_23 = arith.constant dense<0xFF800000> : vector<32xf32>
    %41 = vector.multi_reduction <maximumf>, %40, %cst_23 [1] : vector<32x128xf32> to vector<32xf32>
    %42 = vector.shape_cast %41 : vector<32xf32> to vector<32x1xf32>
    %43 = vector.broadcast %42 : vector<32x1xf32> to vector<32x128xf32>
    %44 = arith.subf %40, %43 : vector<32x128xf32>
    %45 = math.exp %44 : vector<32x128xf32>
    %cst_24 = arith.constant dense<0.000000e+00> : vector<32xf32>
    %46 = vector.multi_reduction <add>, %45, %cst_24 [1] : vector<32x128xf32> to vector<32xf32>
    %47 = vector.shape_cast %46 : vector<32xf32> to vector<32x1xf32>
    %48 = math.log %47 : vector<32x1xf32>
    %49 = vector.broadcast %48 : vector<32x1xf32> to vector<32x128xf32>
    %50 = arith.subf %44, %49 : vector<32x128xf32>
    %c0_25 = arith.constant 0 : index
    %c0_26 = arith.constant 0 : index
    %51 = vector.load %arg7[%c0_25, %c0_26] : memref<32x128xf32, #tpu.memory_space<vmem>>, vector<32x128xf32>
    tpu.vector_store %arg7[%c0_25, %c0_26], %50 {strides = array<i32>} : memref<32x128xf32, #tpu.memory_space<vmem>>, vector<32x128xf32>,
    return
  }
  func.func @transform_0(%arg0: i32) -> (i32, i32) {
    %c0_i32 = arith.constant 0 : i32
    %c0_i32_0 = arith.constant 0 : i32
    %c0_i32_1 = arith.constant 0 : i32
    return %c0_i32, %c0_i32_0 : i32, i32
  }
  func.func @transform_1(%arg0: i32) -> (i32, i32) {
    %c0_i32 = arith.constant 0 : i32
    %c0_i32_0 = arith.constant 0 : i32
    %c0_i32_1 = arith.constant 0 : i32
    return %c0_i32, %c0_i32_0 : i32, i32
  }
  func.func @transform_2(%arg0: i32) -> (i32, i32) {
    %c0_i32 = arith.constant 0 : i32
    %c0_i32_0 = arith.constant 0 : i32
    %c0_i32_1 = arith.constant 0 : i32
    return %c0_i32, %c0_i32_0 : i32, i32
  }
  func.func @transform_3(%arg0: i32) -> (i32, i32) {
    %c0_i32 = arith.constant 0 : i32
    %c0_i32_0 = arith.constant 0 : i32
    %c0_i32_1 = arith.constant 0 : i32
    return %c0_i32, %c0_i32_0 : i32, i32
  }
  func.func @transform_4(%arg0: i32) -> (i32, i32) {
    %c0_i32 = arith.constant 0 : i32
    %c0_i32_0 = arith.constant 0 : i32
    %c0_i32_1 = arith.constant 0 : i32
    return %c0_i32, %c0_i32_0 : i32, i32
  }
  func.func @transform_5(%arg0: i32) -> (i32, i32) {
    %c0_i32 = arith.constant 0 : i32
    %c0_i32_0 = arith.constant 0 : i32
    %c0_i32_1 = arith.constant 0 : i32
    return %c0_i32, %c0_i32_0 : i32, i32
  }
  func.func @transform_6(%arg0: i32) -> (i32, i32) {
    %c0_i32 = arith.constant 0 : i32
    %c0_i32_0 = arith.constant 0 : i32
    %c0_i32_1 = arith.constant 0 : i32
    return %c0_i32, %c0_i32_0 : i32, i32
  }
}

</mosaic_0001>

<bundles_post_ra>
// kernel: tpu_custom_call.1
= control target key start
LH: loop header
LB: loop body
LE: loop exit
PB: predicated region body
PF: predicated region fallthrough
CT: control target
= control target key end

     0   :  { %11 = vsyncpa [#allocation3], 0  ;;  %s978_s0 = inlined_call_operand.hbm [shape: bf16[32,128], index: 0, kind: input, shape index: {}]   ;;  %s979_s1 = inlined_call_operand.hbm [shape: bf16[128,128], index: 1, kind: input, shape index: {}]   ;;  %s980_s2 = inlined_call_operand.vmem [shape: f32[1,128], index: 2, kind: input, shape index: {}]   ;;  %s981_s3 = inlined_call_operand.hbm [shape: bf16[128,128], index: 3, kind: input, shape index: {}]   ;;  %s982_s4 = inlined_call_operand.vmem [shape: f32[1,128], index: 4, kind: input, shape index: {}]   ;;  %s983_s5 = inlined_call_operand.hbm [shape: bf16[32,32], index: 5, kind: input, shape index: {}]   ;;  %s984_s6 = inlined_call_operand.hbm [shape: f32[32,128], index: 6, kind: output, shape index: {}]  }
   0x1   :  { %12 = vsyncpa [#allocation6], 0 }
   0x2   :  { %13 = vsyncpa [#allocation9], 0 }
   0x3   :  { %14 = vsyncpa [#allocation4], 0  ;;  %s891_s21 = smov [#allocation5]   ;;  %s892_s23 = smov [#allocation2]  }
   0x4   :  { %s32_s22 = sshll.u32 %s891_s21, 4  ;;  %s20_s24 = sshll.u32 %s892_s23, 4  ;;  %s33_s22 = int_to_ptr.vmem [resolvable:$true] %s32_s22  ;;  %s21_s24 = int_to_ptr.vmem [resolvable:$true] %s20_s24 }
   0x5   :  { %s791_s25 = scalar_lea.vmem %s33_s22, 1024  ;;  %p796_p1 = scmp.lt.s32.totalorder %s33_s22, %s33_s22 }
   0x6   :  { %p792_p0 = scmp.ne.s32.totalorder %s33_s22, %s791_s25  ;;  %p797_p2 = scmp.lt.s32.totalorder %s791_s25, %s791_s25 }
   0x8   :  { %p798_p3 = por %p797_p2, %p796_p1 }
   0xa   :  { %p799_p4 = pnand %p798_p3, %p792_p0 }
   0xc   :  { %802 = shalt.err (!%p799_p4)
}
   0xd   :  { %s893_s26 = smov 64   ;;  %s894_s27 = smov 4  }
   0xe   :  { %38 = dma.hbm_to_vmem [thread:$0]  %s979_s1, 1024, %s33_s22, [#allocation6], %s893_s26, %s893_s26, %s894_s27  }
   0xf   :  { %s811_s30 = scalar_lea.vmem %s21_s24, 256  ;;  %p816_p6 = scmp.lt.s32.totalorder %s21_s24, %s21_s24 }
  0x10   :  { %p812_p5 = scmp.ne.s32.totalorder %s21_s24, %s811_s30  ;;  %p817_p7 = scmp.lt.s32.totalorder %s811_s30, %s811_s30 }
  0x12   :  { %p818_p8 = por %p817_p7, %p816_p6 }
  0x14   :  { %p819_p9 = pnand %p818_p8, %p812_p5 }
  0x16   :  { %822 = shalt.err (!%p819_p9)
}
  0x17   :  { %26 = dma.hbm_to_vmem [thread:$0]  %s978_s0, 256, %s21_s24, [#allocation3], %s893_s26, %s893_s26, %s894_s27  }
  0x18   :  { %s895_s9 = smov [#allocation7]   ;;  %s896_s11 = smov [#allocation8]  }
  0x19   :  { %s46_s10 = sshll.u32 %s895_s9, 4  ;;  %s60_s12 = sshll.u32 %s896_s11, 4  ;;  %s47_s10 = int_to_ptr.vmem [resolvable:$true] %s46_s10  ;;  %s61_s12 = int_to_ptr.vmem [resolvable:$true] %s60_s12 }
  0x1a   :  { %s831_s1 = scalar_lea.vmem %s47_s10, 1024  ;;  %p836_p11 = scmp.lt.s32.totalorder %s47_s10, %s47_s10 }
  0x1b   :  { %p832_p10 = scmp.ne.s32.totalorder %s47_s10, %s831_s1  ;;  %p837_p12 = scmp.lt.s32.totalorder %s831_s1, %s831_s1 }
  0x1d   :  { %p838_p13 = por %p837_p12, %p836_p11 }
  0x1f   :  { %p839_p0 = pnand %p838_p13, %p832_p10 }
  0x21   :  { %842 = shalt.err (!%p839_p0)
}
  0x22   :  { %52 = dma.hbm_to_vmem [thread:$0]  %s981_s3, 1024, %s47_s10, [#allocation6], %s893_s26, %s893_s26, %s894_s27  }
  0x23   :  { %s851_s0 = scalar_lea.vmem %s61_s12, 256  ;;  %p856_p2 = scmp.lt.s32.totalorder %s61_s12, %s61_s12 }
  0x24   :  { %p852_p1 = scmp.ne.s32.totalorder %s61_s12, %s851_s0  ;;  %p857_p3 = scmp.lt.s32.totalorder %s851_s0, %s851_s0 }
  0x26   :  { %p858_p4 = por %p857_p3, %p856_p2 }
  0x28   :  { %p859_p5 = pnand %p858_p4, %p852_p1 }
  0x2a   :  { %862 = shalt.err (!%p859_p5)
}
  0x2b   :  { %66 = dma.hbm_to_vmem [thread:$0]  %s983_s5, 256, %s61_s12, [#allocation9], %s893_s26, %s893_s26, %s894_s27  }
  0x2c   :  { %883 = dma.done.wait [#allocation3], 256  }
  0x2d   :  { %884 = vsyncadd [#allocation3], 4294967040 }
  0x2e   :  { %885 = dma.done.wait [#allocation6], 2048  }
  0x2f   :  { %886 = vsyncadd [#allocation6], 4294965248 }
  0x30   :  { %887 = dma.done.wait [#allocation9], 256  }
  0x31   :  { %888 = vsyncadd [#allocation9], 4294967040  ;;  %v747_v0 = vld [vmem:[#allocation5 + $0x38] sm:$0xff]   ;;  %v748_v1 = vld [vmem:[#allocation5 + $0x30] sm:$0xff]   ;;  %vm358_vm0 = vcmask 261120  }
  0x32   :  { %674 = vmatprep.subr.bf16.mxu0 %v747_v0  ;;  %v749_v2 = vld [vmem:[#allocation5 + $0x28] sm:$0xff]   ;;  %v750_v3 = vld [vmem:[#allocation5 + $0x20] sm:$0xff]   ;;  %v755_v4 = vld [vmem:[#allocation2] sm:$0xff]  }
  0x33   :  { %675 = vmatpush3.bf16.msra.mxu0 %v747_v0  ;;  %690 = vmatprep.mubr.bf16.mxu0 %v755_v4  ;;  %v757_v5 = vld [vmem:[#allocation7 + $0x38] sm:$0xff]   ;;  %v758_v6 = vld [vmem:[#allocation7 + $0x30] sm:$0xff]   ;;  %v759_v9 = vld [vmem:[#allocation7 + $0x28] sm:$0xff]  }
  0x34   :  { %676 = vmatprep.subr.bf16.mxu0 %v748_v1  ;;  %v751_v7 = vld [vmem:[#allocation5 + $0x18] sm:$0xff]   ;;  %694 = vmatprep.subr.bf16.mxu1 %v757_v5  ;;  %v752_v8 = vld [vmem:[#allocation5 + $0x10] sm:$0xff]   ;;  %v760_v10 = vld [vmem:[#allocation7 + $0x20] sm:$0xff]  }
  0x35   :  { %695 = vmatpush3.bf16.msra.mxu1 %v757_v5  ;;  %v753_v11 = vld [vmem:[#allocation5 + $0x8] sm:$0xff]   ;;  %v761_v12 = vld [vmem:[#allocation7 + $0x18] sm:$0xff]   ;;  %v754_v13 = vld [vmem:[#allocation5] sm:$0xff]  }
  0x36   :  { %696 = vmatprep.subr.bf16.mxu1 %v758_v6  ;;  %v756_v14 = vld [vmem:[#allocation2 + $0x8] sm:$0xff]   ;;  %v762_v15 = vld [vmem:[#allocation7 + $0x10] sm:$0xff]   ;;  %v763_v16 = vld [vmem:[#allocation7 + $0x8] sm:$0xff]  }
  0x37   :  { %677 = vmatpush3.bf16.msra.mxu0 %v748_v1  ;;  %v764_v17 = vld [vmem:[#allocation7] sm:$0xff]   ;;  %v614_v20 = vld [vmem:[%s980_s2] ss:$0 sm:$0xff]  ;;  %v766_v45 = vld [vmem:[#allocation8 + $0x8] sm:$0xff]  }
  0x38   :  { %678 = vmatprep.subr.bf16.mxu0 %v749_v2  ;;  %v765_v33 = vld [vmem:[#allocation8] sm:$0xff]   ;;  %v625_v35 = vld [vmem:[%s982_s4] ss:$0 sm:$0xff]  ;;  %s897_s4 = smov [#allocation10]  }
  0x39   :  { %697 = vmatpush3.bf16.msra.mxu1 %v758_v6  ;;  %s600_s18 = sshll.u32 %s897_s4, 4  ;;  %s601_s18 = int_to_ptr.vmem [resolvable:$true] %s600_s18 }
  0x3a   :  { %698 = vmatprep.subr.bf16.mxu1 %v759_v9  ;;  %s863_s19 = scalar_lea.vmem %s601_s18, 512  ;;  %p868_p7 = scmp.lt.s32.totalorder %s601_s18, %s601_s18 }
  0x3b   :  { %679 = vmatpush3.bf16.msra.mxu0 %v749_v2  ;;  %p864_p6 = scmp.ne.s32.totalorder %s601_s18, %s863_s19  ;;  %p869_p8 = scmp.lt.s32.totalorder %s863_s19, %s863_s19 }
  0x3c   :  { %680 = vmatprep.subr.bf16.mxu0 %v750_v3 }
  0x3d   :  { %699 = vmatpush3.bf16.msra.mxu1 %v759_v9  ;;  %p870_p9 = por %p869_p8, %p868_p7 }
  0x3e   :  { %700 = vmatprep.subr.bf16.mxu1 %v760_v10 }
  0x3f   :  { %681 = vmatpush3.bf16.msra.mxu0 %v750_v3  ;;  %p871_p10 = pnand %p870_p9, %p864_p6 }
  0x40   :  { %682 = vmatprep.subr.bf16.mxu0 %v751_v7 }
  0x41   :  { %701 = vmatpush3.bf16.msra.mxu1 %v760_v10 }
  0x42   :  { %702 = vmatprep.subr.bf16.mxu1 %v761_v12 }
  0x43   :  { %683 = vmatpush3.bf16.msra.mxu0 %v751_v7 }
  0x44   :  { %684 = vmatprep.subr.bf16.mxu0 %v752_v8 }
  0x45   :  { %703 = vmatpush3.bf16.msra.mxu1 %v761_v12 }
  0x46   :  { %704 = vmatprep.subr.bf16.mxu1 %v762_v15 }
  0x47   :  { %685 = vmatpush3.bf16.msra.mxu0 %v752_v8 }
  0x48   :  { %686 = vmatprep.subr.bf16.mxu0 %v753_v11 }
  0x49   :  { %705 = vmatpush3.bf16.msra.mxu1 %v762_v15 }
  0x4a   :  { %706 = vmatprep.subr.bf16.mxu1 %v763_v16 }
  0x4b   :  { %687 = vmatpush3.bf16.msra.mxu0 %v753_v11 }
  0x4c   :  { %688 = vmatprep.subr.bf16.mxu0 %v754_v13 }
  0x4d   :  { %707 = vmatpush3.bf16.msra.mxu1 %v763_v16 }
  0x4e   :  { %708 = vmatprep.subr.bf16.mxu1 %v764_v17 }
  0x4f   :  { %689 = vmatpush3.bf16.msra.mxu0 %v754_v13 }
  0x51   :  { %709 = vmatpush3.bf16.msra.mxu1 %v764_v17 }
  0x52   :  { %691 = vmatmul.mubr.bf16.vlgmr.msra.gmra.mxu0 %v756_v14  ;;  %v544_v14 = vlaneseq }
  0x53   :  { %718 = vmatprep.mubr.msk.bf16.mxu0 %vm358_vm0, %v765_v33 }
  0x54   :  { %v545_v15 = vand.u32 127, %v544_v14 }
  0x56   :  { %vm546_vm1 = vcmp.lt.s32.totalorder %v545_v15, 8 }
 0x112   :  { %v692_v18 = vpop.f32.mrf.mxu0 }
 0x113   :  { %v210_v24 = vadd.f32 %v692_v18, %v614_v20 }
 0x114   :  { %v201_v19 = vpop.f32.mrf.mxu0 }
 0x115   :  { %v202_v22 = vadd.f32 %v614_v20, %v201_v19  ;;  %v218_v30 = vmax.f32 %v210_v24, 0.0 }
 0x116   :  { %v693_v21 = vpop.f32.mrf.mxu0 }
 0x117   :  { %v213_v23 = vadd.f32 %v693_v21, %v614_v20  ;;  %v216_v28 = vmax.f32 %v202_v22, 0.0 }
 0x118   :  { %v204_v25 = vpop.f32.mrf.mxu0 }
 0x119   :  { %v205_v26 = vadd.f32 %v614_v20, %v204_v25  ;;  %v219_v27 = vmax.f32 %v213_v23, 0.0 }
 0x11b   :  { %v217_v29 = vmax.f32 %v205_v26, 0.0  ;;  %v221_v32 = vpack.c.bf16 %v219_v27, %v218_v30 }
 0x11d   :  { %v220_v31 = vpack.c.bf16 %v217_v29, %v216_v28 }
 0x11f   :  { %710 = vmatprep.mubr.bf16.mxu1 %v220_v31 }
 0x120   :  { %711 = vmatmul.mubr.bf16.vlgmr.msra.gmra.mxu1 %v221_v32 }
 0x121   :  { %726 = vmatprep.mubr.msk.bf16.mxu1 %vm358_vm0, %v765_v33 }
 0x1e0   :  { %v712_v34 = vpop.f32.mrf.mxu1 }
 0x1e1   :  { %v336_v38 = vadd.f32 %v712_v34, %v625_v35 }
 0x1e2   :  { %v327_v36 = vpop.f32.mrf.mxu1 }
 0x1e3   :  { %v328_v41 = vadd.f32 %v625_v35, %v327_v36  ;;  %v420_v49 = vmul.f32 0.1, %v336_v38 }
 0x1e4   :  { %v713_v37 = vpop.f32.mrf.mxu1 }
 0x1e5   :  { %v339_v39 = vadd.f32 %v713_v37, %v625_v35  ;;  %v418_v54 = vmul.f32 0.1, %v328_v41 }
 0x1e6   :  { %v330_v40 = vpop.f32.mrf.mxu1 }
 0x1e7   :  { %v347_v42 = vpack.c.bf16 %v339_v39, %v336_v38  ;;  %v331_v43 = vadd.f32 %v625_v35, %v330_v40  ;;  %v421_v51 = vmul.f32 0.1, %v339_v39 }
 0x1e9   :  { %v346_v44 = vpack.c.bf16 %v331_v43, %v328_v41  ;;  %714 = vmatprep.subr.bf16.mxu0 %v347_v42  ;;  %v419_v56 = vmul.f32 0.1, %v331_v43 }
 0x1ea   :  { %715 = vmatpush3.bf16.msra.mxu0 %v347_v42 }
 0x1eb   :  { %716 = vmatprep.subr.bf16.mxu0 %v346_v44 }
 0x1ee   :  { %717 = vmatpush3.bf16.msra.mxu0 %v346_v44 }
 0x1f1   :  { %719 = vmatmul.mubr.msk.bf16.vlgmr.msra.gmra.mxu0 %vm358_vm0, %v766_v45 }
 0x1f2   :  { %734 = vmatprep.mubr.msk.bf16.mxu0 %vm358_vm0, %v765_v33 }
 0x2b1   :  { %v720_v46 = vpop.f32.mrf.mxu0 }
 0x2b2   :  { %v416_v48 = vmul.f32 0.9, %v720_v46 }
 0x2b3   :  { %v399_v47 = vpop.f32.mrf.mxu0 }
 0x2b4   :  { %v414_v52 = vmul.f32 0.9, %v399_v47  ;;  %v424_v57 = vadd.f32 %v420_v49, %v416_v48 }
 0x2b5   :  { %v721_v50 = vpop.f32.mrf.mxu0 }
 0x2b6   :  { %v417_v53 = vmul.f32 0.9, %v721_v50  ;;  %v422_v60 = vadd.f32 %v418_v54, %v414_v52 }
 0x2b7   :  { %v402_v55 = vpop.f32.mrf.mxu0 }
 0x2b8   :  { %v425_v58 = vadd.f32 %v421_v51, %v417_v53  ;;  %v415_v59 = vmul.f32 0.9, %v402_v55 }
 0x2ba   :  { %v423_v61 = vadd.f32 %v419_v56, %v415_v59  ;;  %v427_v62 = vpack.c.bf16 %v425_v58, %v424_v57 }
 0x2bc   :  { %722 = vmatprep.subr.bf16.mxu1 %v427_v62  ;;  %v426_v63 = vpack.c.bf16 %v423_v61, %v422_v60 }
 0x2bd   :  { %723 = vmatpush3.bf16.msra.mxu1 %v427_v62 }
 0x2be   :  { %724 = vmatprep.subr.bf16.mxu1 %v426_v63 }
 0x2c1   :  { %725 = vmatpush3.bf16.msra.mxu1 %v426_v63 }
 0x2c4   :  { %727 = vmatmul.mubr.msk.bf16.vlgmr.msra.gmra.mxu1 %vm358_vm0, %v766_v45 }
 0x384   :  { %v728_v0 = vpop.f32.mrf.mxu1 }
 0x385   :  { %v479_v2 = vmul.f32 0.9, %v728_v0 }
 0x386   :  { %v462_v1 = vpop.f32.mrf.mxu1 }
 0x387   :  { %v477_v4 = vmul.f32 0.9, %v462_v1  ;;  %v483_v7 = vadd.f32 %v479_v2, %v420_v49 }
 0x388   :  { %v729_v3 = vpop.f32.mrf.mxu1 }
 0x389   :  { %v480_v5 = vmul.f32 0.9, %v729_v3  ;;  %v481_v10 = vadd.f32 %v477_v4, %v418_v54 }
 0x38a   :  { %v465_v6 = vpop.f32.mrf.mxu1 }
 0x38b   :  { %v484_v8 = vadd.f32 %v480_v5, %v421_v51  ;;  %v478_v9 = vmul.f32 0.9, %v465_v6 }
 0x38d   :  { %v482_v11 = vadd.f32 %v478_v9, %v419_v56  ;;  %v486_v12 = vpack.c.bf16 %v484_v8, %v483_v7 }
 0x38f   :  { %v485_v13 = vpack.c.bf16 %v482_v11, %v481_v10  ;;  %730 = vmatprep.subr.bf16.mxu0 %v486_v12 }
 0x390   :  { %731 = vmatpush3.bf16.msra.mxu0 %v486_v12 }
 0x391   :  { %732 = vmatprep.subr.bf16.mxu0 %v485_v13 }
 0x394   :  { %733 = vmatpush3.bf16.msra.mxu0 %v485_v13 }
 0x397   :  { %735 = vmatmul.mubr.msk.bf16.vlgmr.msra.gmra.mxu0 %vm358_vm0, %v766_v45 }
 0x457   :  { %v736_v16 = vpop.f32.mrf.mxu0 }
 0x458   :  { %v538_v17 = vmul.f32 0.9, %v736_v16 }
 0x459   :  { %v521_v18 = vpop.f32.mrf.mxu0 }
 0x45a   :  { %v536_v19 = vmul.f32 0.9, %v521_v18  ;;  %v542_v20 = vadd.f32 %v538_v17, %v420_v49 }
 0x45b   :  { %v737_v21 = vpop.f32.mrf.mxu0 }
 0x45c   :  { %v539_v22 = vmul.f32 0.9, %v737_v21  ;;  %v549_v23 = vsel %vm546_vm1, %v542_v20, -inf  ;;  %v540_v24 = vadd.f32 %v536_v19, %v418_v54 }
 0x45d   :  { %555 = vmax.xlane.f32.xlu1 %v549_v23  ;;  %v524_v25 = vpop.f32.mrf.mxu0 }
 0x45e   :  { %v537_v26 = vmul.f32 0.9, %v524_v25  ;;  %v547_v27 = vsel %vm546_vm1, %v540_v24, -inf  ;;  %v543_v28 = vadd.f32 %v539_v22, %v421_v51 }
 0x45f   :  { %551 = vmax.xlane.f32.xlu0 %v547_v27 }
 0x460   :  { %v541_v29 = vadd.f32 %v537_v26, %v419_v56  ;;  %v550_v30 = vsel %vm546_vm1, %v543_v28, -inf }
 0x461   :  { %557 = vmax.xlane.f32.xlu1 %v550_v30 }
 0x462   :  { %v548_v31 = vsel %vm546_vm1, %v541_v29, -inf }
 0x463   :  { %553 = vmax.xlane.f32.xlu0 %v548_v31 }
 0x4e6   :  { %v556_v32 = vpop.xlane.xlu1 %555 }
 0x4e7   :  { %v561_v33 = vsub.f32 %v549_v23, %v556_v32 }
 0x4e8   :  { %v552_v34 = vpop.xlane.xlu0 %551 }
 0x4e9   :  { %v559_v35 = vsub.f32 %v547_v27, %v552_v34  ;;  %v567_v38 = vmul.f32 1.442695, %v561_v33 }
 0x4ea   :  { %v558_v36 = vpop.xlane.xlu1 %557 }
 0x4eb   :  { %v563_v37 = vmul.f32 1.442695, %v559_v35  ;;  %v562_v40 = vsub.f32 %v550_v30, %v558_v36 }
 0x4ec   :  { %v554_v39 = vpop.xlane.xlu0 %553 }
 0x4ed   :  { %767 = vpow2.f32 %v563_v37  ;;  %v560_v41 = vsub.f32 %v548_v31, %v554_v39  ;;  %v569_v43 = vmul.f32 1.442695, %v562_v40 }
 0x4ee   :  { %769 = vpow2.f32 %v567_v38 }
 0x4ef   :  { %v565_v42 = vmul.f32 1.442695, %v560_v41 }
 0x4f1   :  { %771 = vpow2.f32 %v565_v42 }
 0x4f2   :  { %773 = vpow2.f32 %v569_v43 }
 0x4fa   :  { %v768_v44 = vpop.eup %767 }
 0x4fb   :  { %571 = vadd.xlane.f32.xlu0 %v768_v44  ;;  %v770_v45 = vpop.eup %769 }
 0x4fe   :  { %v772_v46 = vpop.eup %771 }
 0x4ff   :  { %575 = vadd.xlane.f32.xlu0 %v770_v45  ;;  %573 = vadd.xlane.f32.xlu1 %v772_v46  ;;  %v774_v47 = vpop.eup %773 }
 0x503   :  { %577 = vadd.xlane.f32.xlu1 %v774_v47 }
 0x584   :  { %v572_v48 = vpop.xlane.xlu0 %571 }
 0x585   :  { %775 = vlog2.f32 %v572_v48 }
 0x588   :  { %v574_v49 = vpop.xlane.xlu1 %573  ;;  %v576_v50 = vpop.xlane.xlu0 %575 }
 0x589   :  { %777 = vlog2.f32 %v574_v49 }
 0x58a   :  { %779 = vlog2.f32 %v576_v50 }
 0x58c   :  { %v578_v51 = vpop.xlane.xlu1 %577 }
 0x58d   :  { %781 = vlog2.f32 %v578_v51 }
 0x592   :  { %v776_v52 = vpop.eup %775 }
 0x593   :  { %v580_v53 = vmul.f32 0.6931472, %v776_v52 }
 0x595   :  { %v587_v54 = vsub.f32 %v559_v35, %v580_v53 }
 0x596   :  { %v778_v55 = vpop.eup %777 }
 0x597   :  { %v780_v56 = vpop.eup %779  ;;  %591 = vst [vmem:[#allocation10] sm:$0xff] %v587_v54  ;;  %v582_v57 = vmul.f32 0.6931472, %v778_v55 }
 0x598   :  { %v584_v58 = vmul.f32 0.6931472, %v780_v56 }
 0x599   :  { %v588_v59 = vsub.f32 %v560_v41, %v582_v57 }
 0x59a   :  { %v782_v60 = vpop.eup %781  ;;  %v589_v61 = vsub.f32 %v561_v33, %v584_v58 }
 0x59b   :  { %592 = vst [vmem:[#allocation10 + $0x8] sm:$0xff] %v588_v59  ;;  %v586_v62 = vmul.f32 0.6931472, %v782_v60 }
 0x59c   :  { %593 = vst [vmem:[#allocation10 + $0x10] sm:$0xff] %v589_v61 }
 0x59d   :  { %v590_v63 = vsub.f32 %v562_v40, %v586_v62 }
 0x59f   :  { %594 = vst [vmem:[#allocation10 + $0x18] sm:$0xff] %v590_v63 }
 0x5a0   :  { %874 = shalt.err (!%p871_p10)
}
 0x5a1   :  { %s898_s20 = smov 128   ;;  %s899_s21 = smov 8  }
 0x5a2   :  { %606 = dma.vmem_to_hbm [thread:$0]  %s601_s18, 512, %s984_s6, [#allocation4], %s898_s20, %s898_s20, %s899_s21  }
 0x5a3   :  { %889 = dma.done.wait [#allocation4], 512  }
 0x5a4   :  { %890 = vsyncadd [#allocation4], 4294966784 }
 0x5a5   :  { %610 = vsyncpa [#allocation3], 1 }
 0x5a6   :  { %611 = vsyncpa [#allocation6], 1 }
 0x5a7   :  { %612 = vsyncpa [#allocation9], 1 }
 0x5a8   :  { %613 = vsyncpa [#allocation4], 1 }

</bundles_post_ra>
